<compile_context>
chip_gen: v7x
topology: tpu7x:2x2x1
jax: 0.10.0
libtpu: 0.0.40
codegen_flags: <defaults>
</compile_context>

<pallas_src>
import functools

import jax
import jax.numpy as jnp
from jax.experimental import pallas as pl
from jax.experimental.pallas import tpu as pltpu

LANE = 128       # vreg lane width
SUBLANE = 16     # bf16-safe sublane granularity


def _round_up(x, m):
    return (x + m - 1) // m * m


@functools.lru_cache()
def _vmem_limit_bytes():
    """~3/4 of physical VMEM: ~96 MiB on v5e/v6e, ~48 MiB on v7x."""
    try:
        cap = pltpu.get_tpu_info().vmem_capacity_bytes
    except Exception:
        cap = 64 * 1024 * 1024
    return int(min(cap * 3 // 4, 100 * 1024 * 1024))


def _choose_tiles(num_user, num_item, embed):
    """Lane-dense padding + user-row tile sized against the VMEM budget."""
    e_pad = _round_up(max(embed, 1), LANE)
    i_pad = _round_up(max(num_item, 1), LANE)
    budget = _vmem_limit_bytes()
    # VMEM-resident per layer: item embeddings (bf16, double-buffered input),
    # f32 item accumulator scratch, bf16 resident item output.
    resident = i_pad * e_pad * (2 * 2 + 4 + 2)
    # Per user row: A slab (bf16, double-buffered) + user-out tile (bf16, x2).
    per_row = 2 * 2 * i_pad + 2 * 2 * e_pad
    tm = max(budget - resident, SUBLANE * per_row) // per_row
    tm = max(SUBLANE, min(1024, _round_up(num_user, SUBLANE),
                          tm // SUBLANE * SUBLANE))
    u_pad = _round_up(num_user, tm)
    # TODO(synk): if `resident` alone exceeds `budget` (very large item sets),
    # chunk the item axis into column groups instead of one resident pass.
    return u_pad, i_pad, e_pad, tm


# ----------------------------------------------------------------------------
# Kernel 1: fused LightGCN propagation layer.
#   For each user-row slab i (full slab resident in VMEM):
#     ue_i      = A[i,:] @ E_item           (user <- item)
#     item_acc += A[i,:]^T @ ue_i           (item <- user, same slab re-used)
#   A is streamed from HBM exactly once per layer; E_item is resident.
# ----------------------------------------------------------------------------
def _fused_layer_kernel(a_ref, e_item_ref, u_out_ref, i_out_ref, i_acc_ref):
    i = pl.program_id(0)

    @pl.when(i == 0)
    def _init():
        i_acc_ref[...] = jnp.zeros_like(i_acc_ref)

    a = a_ref[...]                                          # (tm, I_pad) bf16
    # user <- item: full item reduction for this row-slab on the MXU.
    ue = jnp.dot(a, e_item_ref[...],
                 preferred_element_type=jnp.float32)        # (tm, E_pad) f32
    ue_bf = ue.astype(jnp.bfloat16)
    u_out_ref[...] = ue_bf

    # item <- user: contract A's row axis against ue (no transposed copy of A
    # in HBM; the VMEM-resident slab is re-used, so A is read from HBM once).
    i_acc_ref[...] += jax.lax.dot_general(
        a, ue_bf, dimension_numbers=(((0,), (0,)), ((), ())),
        preferred_element_type=jnp.float32)                 # (I_pad, E_pad)

    @pl.when(i == pl.num_programs(0) - 1)
    def _store():
        i_out_ref[...] = i_acc_ref[...].astype(i_out_ref.dtype)


def fused_gcn_layer(a_bf, item_emb_bf, *, tm):
    """One LightGCN layer.  a_bf: (U_pad,I_pad) bf16, item_emb_bf: (I_pad,E_pad)
    bf16.  Returns (new user embeddings (U_pad,E_pad) bf16,
                    new item embeddings (I_pad,E_pad) bf16)."""
    u_pad, i_pad = a_bf.shape
    i_pad2, e_pad = item_emb_bf.shape
    assert i_pad == i_pad2 and u_pad % tm == 0
    cost = pl.CostEstimate(
        flops=4 * u_pad * i_pad * e_pad, transcendentals=0,
        bytes_accessed=(a_bf.size * 2 + item_emb_bf.size * 2
                        + u_pad * e_pad * 2 + i_pad * e_pad * 2))
    return pl.pallas_call(
        _fused_layer_kernel,
        out_shape=(jax.ShapeDtypeStruct((u_pad, e_pad), jnp.bfloat16),
                   jax.ShapeDtypeStruct((i_pad, e_pad), jnp.bfloat16)),
        grid_spec=pltpu.PrefetchScalarGridSpec(
            num_scalar_prefetch=0,
            grid=(u_pad // tm,),
            in_specs=[
                # A row-slab: streamed from HBM exactly once over the grid.
                pl.BlockSpec((tm, i_pad), lambda i: (i, 0)),
                # Item embeddings: constant index_map -> DMA'd once, resident.
                pl.BlockSpec((i_pad, e_pad), lambda i: (0, 0)),
            ],
            out_specs=(
                pl.BlockSpec((tm, e_pad), lambda i: (i, 0)),
                # Resident item output; written back once after the last step.
                pl.BlockSpec((i_pad, e_pad), lambda i: (0, 0)),
            ),
            scratch_shapes=[pltpu.VMEM((i_pad, e_pad), jnp.float32)],
        ),
        compiler_params=pltpu.CompilerParams(
            dimension_semantics=("arbitrary",),
            vmem_limit_bytes=_vmem_limit_bytes()),
        cost_estimate=cost,
    )(a_bf, item_emb_bf)


# ----------------------------------------------------------------------------
# Kernel 2: fused BPR loss, tiled over the batch with a running accumulator.
#   loss = sum(logsigmoid(sum(u*(p-n), -1)))
#   reg  = wd * 0.5 * (||ue||^2 + ||pe||^2 + ||ne||^2) / num_device
#   out  = -loss + reg
# ----------------------------------------------------------------------------
def _bpr_loss_kernel(u_ref, p_ref, n_ref, ue_ref, pe_ref, ne_ref, o_ref,
                     acc_ref, *, weight_decay, num_device, batch, tb):
    i = pl.program_id(0)

    @pl.when(i == 0)
    def _init():
        acc_ref[...] = jnp.zeros_like(acc_ref)

    u = u_ref[...]
    x = jnp.sum(u * (p_ref[...] - n_ref[...]), axis=1, keepdims=True)  # (tb,1)
    # numerically stable logsigmoid(x) = min(x,0) - log(1 + exp(-|x|))
    ls = jnp.minimum(x, 0.0) - jnp.log(1.0 + jnp.exp(-jnp.abs(x)))
    rows = i * tb + jax.lax.broadcasted_iota(jnp.int32, (tb, 1), 0)
    ls = jnp.where(rows < batch, ls, 0.0)       # mask zero-padded batch rows
    loss = jnp.sum(ls, keepdims=True)           # (1,1)

    sq = (jnp.sum(ue_ref[...] * ue_ref[...], keepdims=True)
          + jnp.sum(pe_ref[...] * pe_ref[...], keepdims=True)
          + jnp.sum(ne_ref[...] * ne_ref[...], keepdims=True))          # (1,1)
    reg = weight_decay * 0.5 * sq / float(num_device)

    acc_ref[...] += -loss + reg

    @pl.when(i == pl.num_programs(0) - 1)
    def _store():
        o_ref[...] = acc_ref[...]


def bpr_loss(u_out, p_out, n_out, u_emb, p_emb, n_emb, *,
             weight_decay, num_device):
    B, D = u_out.shape
    assert D % LANE == 0, "embedding axis must be lane-padded before the loss"
    tb = min(256, _round_up(B, 8))
    Bp = _round_up(B, tb)

    def _pad(x):
        return x if Bp == B else jnp.pad(x, ((0, Bp - B), (0, 0)))

    args = [_pad(a.astype(jnp.float32)) for a in
            (u_out, p_out, n_out, u_emb, p_emb, n_emb)]
    kernel = functools.partial(_bpr_loss_kernel,
                               weight_decay=float(weight_decay),
                               num_device=int(num_device),
                               batch=int(B), tb=int(tb))
    spec = pl.BlockSpec((tb, D), lambda i: (i, 0))
    out = pl.pallas_call(
        kernel,
        out_shape=jax.ShapeDtypeStruct((1, 1), jnp.float32),
        grid_spec=pltpu.PrefetchScalarGridSpec(
            num_scalar_prefetch=0,
            grid=(Bp // tb,),
            in_specs=[spec] * 6,
            out_specs=pl.BlockSpec((1, 1), lambda i: (0, 0)),
            scratch_shapes=[pltpu.VMEM((1, 1), jnp.float32)],
        ),
        compiler_params=pltpu.CompilerParams(
            dimension_semantics=("arbitrary",)),
    )(*args)
    return out[0, 0]


# ----------------------------------------------------------------------------
# LightGCN forward (functional)
# ----------------------------------------------------------------------------
def lightgcn_forward(params, user, pos, neg, *, num_gc, weight_decay,
                     num_device):
    user_w = params["user_embedding"]      # (U, E) f32
    item_w = params["item_embedding"]      # (I, E) f32
    a_ui = params["user_item_norm"]        # (U, I) dense normalized adjacency

    num_users, embed = user_w.shape
    num_items = item_w.shape[0]

    u_pad, i_pad, e_pad, tm = _choose_tiles(num_users, num_items, embed)

    a_bf = jnp.pad(a_ui, ((0, u_pad - num_users),
                          (0, i_pad - num_items))).astype(jnp.bfloat16)
    uw = jnp.pad(user_w, ((0, u_pad - num_users), (0, e_pad - embed)))
    iw = jnp.pad(item_w, ((0, i_pad - num_items), (0, e_pad - embed)))

    user_embed = jnp.take(uw, user, axis=0)        # (B, e_pad) f32, layer 0
    pos_embed = jnp.take(iw, pos, axis=0)
    neg_embed = jnp.take(iw, neg, axis=0)

    # Layer-average as a running sum (gathered rows are tiny: B x e_pad, f32).
    user_sum, pos_sum, neg_sum = user_embed, pos_embed, neg_embed

    item_embeddings = iw.astype(jnp.bfloat16)      # feeds layer 1
    for _ in range(num_gc):
        user_embeddings, item_embeddings = fused_gcn_layer(
            a_bf, item_embeddings, tm=tm)          # bf16, bf16
        user_sum = user_sum + jnp.take(user_embeddings, user,
                                       axis=0).astype(jnp.float32)
        pos_sum = pos_sum + jnp.take(item_embeddings, pos,
                                     axis=0).astype(jnp.float32)
        neg_sum = neg_sum + jnp.take(item_embeddings, neg,
                                     axis=0).astype(jnp.float32)

    inv = 1.0 / float(num_gc + 1)
    return bpr_loss(user_sum * inv, pos_sum * inv, neg_sum * inv,
                    user_embed, pos_embed, neg_embed,
                    weight_decay=weight_decay, num_device=num_device)


# ----------------------------------------------------------------------------
# Pure-JAX reference with identical mixed precision (bf16 operands/outputs,
# f32 accumulation) to validate the Pallas path.
# ----------------------------------------------------------------------------
def lightgcn_reference(params, user, pos, neg, *, num_gc, weight_decay,
                       num_device):
    user_w = params["user_embedding"]
    item_w = params["item_embedding"]
    a_bf = params["user_item_norm"].astype(jnp.bfloat16)

    user_embed = user_w[user]
    pos_embed = item_w[pos]
    neg_embed = item_w[neg]

    ie = item_w.astype(jnp.bfloat16)
    uo, po, no = [user_embed], [pos_embed], [neg_embed]
    for _ in range(num_gc):
        ue = jnp.dot(a_bf, ie,
                     preferred_element_type=jnp.float32).astype(jnp.bfloat16)
        ie = jnp.dot(a_bf.T, ue,
                     preferred_element_type=jnp.float32).astype(jnp.bfloat16)
        uo.append(ue[user].astype(jnp.float32))
        po.append(ie[pos].astype(jnp.float32))
        no.append(ie[neg].astype(jnp.float32))
    u = jnp.mean(jnp.stack(uo, 1), 1)
    p = jnp.mean(jnp.stack(po, 1), 1)
    n = jnp.mean(jnp.stack(no, 1), 1)
    out = jnp.sum(u * (p - n), 1)
    loss = jnp.sum(jax.nn.log_sigmoid(out))
    reg = weight_decay * (0.5 * (jnp.sum(user_embed ** 2)
                                 + jnp.sum(pos_embed ** 2)
                                 + jnp.sum(neg_embed ** 2)) / float(num_device))
    return -loss + reg


# ----------------------------------------------------------------------------
# main
# ----------------------------------------------------------------------------
if __name__ == "__main__":
    # small config consistent with the module
    num_device = 64       # users
    num_product = 96      # items
    embed_size = 32
    num_gc = 2
    weight_decay = 1e-4
    batch = 8

    key = jax.random.PRNGKey(0)
    k_u, k_i, k_adj, k_user, k_pos, k_neg = jax.random.split(key, 6)

    # deterministic parameter init (nn.init.normal_, std=0.1)
    user_embedding = 0.1 * jax.random.normal(k_u, (num_device, embed_size),
                                             dtype=jnp.float32)
    item_embedding = 0.1 * jax.random.normal(k_i, (num_product, embed_size),
                                             dtype=jnp.float32)

    # synthetic normalized bipartite adjacency (D_u^-1/2 A D_i^-1/2), dense.
    # item_user_norm of the PyTorch module is user_item_norm^T; a single dense
    # copy is kept and the transposed contraction is done in-kernel.
    adj = (jax.random.uniform(k_adj, (num_device, num_product)) < 0.1
           ).astype(jnp.float32)
    deg_u = jnp.clip(adj.sum(axis=1, keepdims=True), 1.0)
    deg_i = jnp.clip(adj.sum(axis=0, keepdims=True), 1.0)
    user_item_norm = adj * jax.lax.rsqrt(deg_u) * jax.lax.rsqrt(deg_i)

    params = {
        "user_embedding": user_embedding,
        "item_embedding": item_embedding,
        "user_item_norm": user_item_norm,
    }

    user = jax.random.randint(k_user, (batch,), 0, num_device)
    pos = jax.random.randint(k_pos, (batch,), 0, num_product)
    neg = jax.random.randint(k_neg, (batch,), 0, num_product)

    fwd = jax.jit(functools.partial(lightgcn_forward,
                                    num_gc=num_gc,
                                    weight_decay=weight_decay,
                                    num_device=num_device))
    loss = fwd(params, user, pos, neg)
    jax.block_until_ready(loss)

    ref = lightgcn_reference(params, user, pos, neg,
                             num_gc=num_gc,
                             weight_decay=weight_decay,
                             num_device=num_device)
    assert jnp.allclose(loss, ref, rtol=1e-2, atol=1e-2), (loss, ref)

    print("KERNEL_OK")
</pallas_src>

<mosaic_0001>
module attributes {stable_mosaic.version = 11 : i64} {
  func.func @_fused_layer_kernel(%arg0: i32, %arg1: memref<64x128xbf16, #tpu.memory_space<vmem>>, %arg2: memref<128x128xbf16, #tpu.memory_space<vmem>>, %arg3: memref<64x128xbf16, #tpu.memory_space<vmem>>, %arg4: memref<128x128xbf16, #tpu.memory_space<vmem>>, %arg5: memref<128x128xf32, #tpu.memory_space<vmem>>) attributes {dimension_semantics = [#tpu.dimension_semantics<arbitrary>], iteration_bounds = array<i64: 1>, scalar_prefetch = 0 : i64, scratch_operands = 1 : i64, tpu.core_type = #tpu.core_type<tc>, window_params = [{transform_indices = @transform_0, window_bounds = array<i64: 64, 128>}, {pipeline_mode = #tpu.pipeline_mode<synchronous>, transform_indices = @transform_1, window_bounds = array<i64: 128, 128>}, {transform_indices = @transform_2, window_bounds = array<i64: 64, 128>}, {pipeline_mode = #tpu.pipeline_mode<synchronous>, transform_indices = @transform_3, window_bounds = array<i64: 128, 128>}]} {
    %c0_i32 = arith.constant 0 : i32
    %0 = arith.cmpi eq, %arg0, %c0_i32 : i32
    %1 = arith.extui %0 : i1 to i32
    %c0_i32_0 = arith.constant 0 : i32
    %2 = arith.cmpi ne, %1, %c0_i32_0 : i32
    scf.if %2 {
      %cst_13 = arith.constant 0.000000e+00 : f32
      %15 = vector.broadcast %cst_13 : f32 to vector<128x128xf32>
      %c0_14 = arith.constant 0 : index
      %c0_15 = arith.constant 0 : index
      %16 = vector.load %arg5[%c0_14, %c0_15] : memref<128x128xf32, #tpu.memory_space<vmem>>, vector<128x128xf32>
      tpu.vector_store %arg5[%c0_14, %c0_15], %15 {strides = array<i32>} : memref<128x128xf32, #tpu.memory_space<vmem>>, vector<128x128xf32>,
    } else {
    }
    %c0 = arith.constant 0 : index
    %c0_1 = arith.constant 0 : index
    %3 = vector.load %arg1[%c0, %c0_1] : memref<64x128xbf16, #tpu.memory_space<vmem>>, vector<64x128xbf16>
    %c0_2 = arith.constant 0 : index
    %c0_3 = arith.constant 0 : index
    %4 = vector.load %arg2[%c0_2, %c0_3] : memref<128x128xbf16, #tpu.memory_space<vmem>>, vector<128x128xbf16>
    %cst = arith.constant dense<0.000000e+00> : vector<64x128xf32>
    %5 = tpu.matmul %3, %4, %cst {dimension_numbers = #tpu.dot_dimension_numbers<[1], [0], [0], [1], [0, 0, 1, 1], [], []>} : vector<64x128xbf16>, vector<128x128xbf16>, vector<64x128xf32> -> vector<64x128xf32>
    %6 = arith.truncf %5 : vector<64x128xf32> to vector<64x128xbf16>
    %c0_4 = arith.constant 0 : index
    %c0_5 = arith.constant 0 : index
    %7 = vector.load %arg3[%c0_4, %c0_5] : memref<64x128xbf16, #tpu.memory_space<vmem>>, vector<64x128xbf16>
    tpu.vector_store %arg3[%c0_4, %c0_5], %6 {strides = array<i32>} : memref<64x128xbf16, #tpu.memory_space<vmem>>, vector<64x128xbf16>,
    %c0_6 = arith.constant 0 : index
    %c0_7 = arith.constant 0 : index
    %8 = vector.load %arg5[%c0_6, %c0_7] : memref<128x128xf32, #tpu.memory_space<vmem>>, vector<128x128xf32>
    %cst_8 = arith.constant dense<0.000000e+00> : vector<128x128xf32>
    %9 = tpu.matmul %3, %6, %cst_8 {dimension_numbers = #tpu.dot_dimension_numbers<[0], [0], [1], [1], [0, 1, 1, 1], [], []>} : vector<64x128xbf16>, vector<64x128xbf16>, vector<128x128xf32> -> vector<128x128xf32>
    %10 = arith.addf %8, %9 : vector<128x128xf32>
    %c0_9 = arith.constant 0 : index
    %c0_10 = arith.constant 0 : index
    %11 = vector.load %arg5[%c0_9, %c0_10] : memref<128x128xf32, #tpu.memory_space<vmem>>, vector<128x128xf32>
    tpu.vector_store %arg5[%c0_9, %c0_10], %10 {strides = array<i32>} : memref<128x128xf32, #tpu.memory_space<vmem>>, vector<128x128xf32>,
    %c0_i32_11 = arith.constant 0 : i32
    %12 = arith.cmpi eq, %arg0, %c0_i32_11 : i32
    %13 = arith.extui %12 : i1 to i32
    %c0_i32_12 = arith.constant 0 : i32
    %14 = arith.cmpi ne, %13, %c0_i32_12 : i32
    scf.if %14 {
      %c0_13 = arith.constant 0 : index
      %c0_14 = arith.constant 0 : index
      %15 = vector.load %arg5[%c0_13, %c0_14] : memref<128x128xf32, #tpu.memory_space<vmem>>, vector<128x128xf32>
      %16 = arith.truncf %15 : vector<128x128xf32> to vector<128x128xbf16>
      %c0_15 = arith.constant 0 : index
      %c0_16 = arith.constant 0 : index
      %17 = vector.load %arg4[%c0_15, %c0_16] : memref<128x128xbf16, #tpu.memory_space<vmem>>, vector<128x128xbf16>
      tpu.vector_store %arg4[%c0_15, %c0_16], %16 {strides = array<i32>} : memref<128x128xbf16, #tpu.memory_space<vmem>>, vector<128x128xbf16>,
    } else {
    }
    return
  }
  func.func @transform_0(%arg0: i32) -> (i32, i32) {
    %c0_i32 = arith.constant 0 : i32
    %c0_i32_0 = arith.constant 0 : i32
    return %arg0, %c0_i32 : i32, i32
  }
  func.func @transform_1(%arg0: i32) -> (i32, i32) {
    %c0_i32 = arith.constant 0 : i32
    %c0_i32_0 = arith.constant 0 : i32
    %c0_i32_1 = arith.constant 0 : i32
    return %c0_i32, %c0_i32_0 : i32, i32
  }
  func.func @transform_2(%arg0: i32) -> (i32, i32) {
    %c0_i32 = arith.constant 0 : i32
    %c0_i32_0 = arith.constant 0 : i32
    return %arg0, %c0_i32 : i32, i32
  }
  func.func @transform_3(%arg0: i32) -> (i32, i32) {
    %c0_i32 = arith.constant 0 : i32
    %c0_i32_0 = arith.constant 0 : i32
    %c0_i32_1 = arith.constant 0 : i32
    return %c0_i32, %c0_i32_0 : i32, i32
  }
}

module attributes {stable_mosaic.version = 11 : i64} {
  func.func @_bpr_loss_kernel(%arg0: i32, %arg1: memref<8x128xf32, #tpu.memory_space<vmem>>, %arg2: memref<8x128xf32, #tpu.memory_space<vmem>>, %arg3: memref<8x128xf32, #tpu.memory_space<vmem>>, %arg4: memref<8x128xf32, #tpu.memory_space<vmem>>, %arg5: memref<8x128xf32, #tpu.memory_space<vmem>>, %arg6: memref<8x128xf32, #tpu.memory_space<vmem>>, %arg7: memref<1x1xf32, #tpu.memory_space<vmem>>, %arg8: memref<1x1xf32, #tpu.memory_space<vmem>>) attributes {dimension_semantics = [#tpu.dimension_semantics<arbitrary>], iteration_bounds = array<i64: 1>, scalar_prefetch = 0 : i64, scratch_operands = 1 : i64, tpu.core_type = #tpu.core_type<tc>, window_params = [{transform_indices = @transform_0, window_bounds = array<i64: 8, 128>}, {transform_indices = @transform_1, window_bounds = array<i64: 8, 128>}, {transform_indices = @transform_2, window_bounds = array<i64: 8, 128>}, {transform_indices = @transform_3, window_bounds = array<i64: 8, 128>}, {transform_indices = @transform_4, window_bounds = array<i64: 8, 128>}, {transform_indices = @transform_5, window_bounds = array<i64: 8, 128>}, {pipeline_mode = #tpu.pipeline_mode<synchronous>, transform_indices = @transform_6, window_bounds = array<i64: 1, 1>}]} {
    %c0_i32 = arith.constant 0 : i32
    %0 = arith.cmpi eq, %arg0, %c0_i32 : i32
    %1 = arith.extui %0 : i1 to i32
    %c0_i32_0 = arith.constant 0 : i32
    %2 = arith.cmpi ne, %1, %c0_i32_0 : i32
    scf.if %2 {
      %cst_36 = arith.constant 0.000000e+00 : f32
      %72 = vector.broadcast %cst_36 : f32 to vector<1x1xf32>
      %c0_37 = arith.constant 0 : index
      %c0_38 = arith.constant 0 : index
      %73 = vector.load %arg8[%c0_37, %c0_38] : memref<1x1xf32, #tpu.memory_space<vmem>>, vector<1x1xf32>
      tpu.vector_store %arg8[%c0_37, %c0_38], %72 {strides = array<i32>} : memref<1x1xf32, #tpu.memory_space<vmem>>, vector<1x1xf32>,
    } else {
    }
    %c0 = arith.constant 0 : index
    %c0_1 = arith.constant 0 : index
    %3 = vector.load %arg1[%c0, %c0_1] : memref<8x128xf32, #tpu.memory_space<vmem>>, vector<8x128xf32>
    %c0_2 = arith.constant 0 : index
    %c0_3 = arith.constant 0 : index
    %4 = vector.load %arg2[%c0_2, %c0_3] : memref<8x128xf32, #tpu.memory_space<vmem>>, vector<8x128xf32>
    %c0_4 = arith.constant 0 : index
    %c0_5 = arith.constant 0 : index
    %5 = vector.load %arg3[%c0_4, %c0_5] : memref<8x128xf32, #tpu.memory_space<vmem>>, vector<8x128xf32>
    %6 = arith.subf %4, %5 : vector<8x128xf32>
    %7 = arith.mulf %3, %6 : vector<8x128xf32>
    %cst = arith.constant dense<0.000000e+00> : vector<8xf32>
    %8 = vector.multi_reduction <add>, %7, %cst [1] : vector<8x128xf32> to vector<8xf32>
    %9 = vector.shape_cast %8 : vector<8xf32> to vector<8x1xf32>
    %cst_6 = arith.constant 0.000000e+00 : f32
    %10 = vector.broadcast %cst_6 : f32 to vector<8x1xf32>
    %11 = arith.minimumf %9, %10 : vector<8x1xf32>
    %12 = math.absf %9 : vector<8x1xf32>
    %cst_7 = arith.constant 0.000000e+00 : f32
    %13 = vector.broadcast %cst_7 : f32 to vector<8x1xf32>
    %14 = arith.subf %13, %12 : vector<8x1xf32>
    %15 = math.exp %14 : vector<8x1xf32>
    %cst_8 = arith.constant 1.000000e+00 : f32
    %16 = vector.broadcast %cst_8 : f32 to vector<8x1xf32>
    %17 = arith.addf %16, %15 : vector<8x1xf32>
    %18 = math.log %17 : vector<8x1xf32>
    %19 = arith.subf %11, %18 : vector<8x1xf32>
    %c8_i32 = arith.constant 8 : i32
    %20 = arith.muli %arg0, %c8_i32 : i32
    %21 = tpu.iota {dimensions = array<i32: 0>} : vector<8x1xi32>
    %22 = vector.broadcast %20 : i32 to vector<8x1xi32>
    %23 = arith.addi %22, %21 : vector<8x1xi32>
    %c8_i32_9 = arith.constant 8 : i32
    %24 = vector.broadcast %c8_i32_9 : i32 to vector<8x1xi32>
    %25 = arith.cmpi slt, %23, %24 : vector<8x1xi32>
    %cst_10 = arith.constant 0.000000e+00 : f32
    %26 = vector.broadcast %cst_10 : f32 to vector<8x1xf32>
    %27 = arith.select %25, %19, %26 : vector<8x1xi1>, vector<8x1xf32>
    %28 = vector.shape_cast %27 : vector<8x1xf32> to vector<1x8x1xf32>
    %cst_11 = arith.constant dense<0.000000e+00> : vector<1xf32>
    %29 = vector.multi_reduction <add>, %28, %cst_11 [1, 2] : vector<1x8x1xf32> to vector<1xf32>
    %30 = vector.shape_cast %29 : vector<1xf32> to vector<1x1x1xf32>
    %31 = vector.extract %30[0, 0, 0] : f32 from vector<1x1x1xf32>
    %32 = vector.broadcast %31 : f32 to vector<1x1xf32>
    %c0_12 = arith.constant 0 : index
    %c0_13 = arith.constant 0 : index
    %33 = vector.load %arg4[%c0_12, %c0_13] : memref<8x128xf32, #tpu.memory_space<vmem>>, vector<8x128xf32>
    %c0_14 = arith.constant 0 : index
    %c0_15 = arith.constant 0 : index
    %34 = vector.load %arg4[%c0_14, %c0_15] : memref<8x128xf32, #tpu.memory_space<vmem>>, vector<8x128xf32>
    %35 = arith.mulf %33, %34 : vector<8x128xf32>
    %36 = vector.shape_cast %35 : vector<8x128xf32> to vector<1x8x128xf32>
    %cst_16 = arith.constant dense<0.000000e+00> : vector<1xf32>
    %37 = vector.multi_reduction <add>, %36, %cst_16 [1, 2] : vector<1x8x128xf32> to vector<1xf32>
    %38 = vector.shape_cast %37 : vector<1xf32> to vector<1x1x1xf32>
    %39 = vector.extract %38[0, 0, 0] : f32 from vector<1x1x1xf32>
    %40 = vector.broadcast %39 : f32 to vector<1x1xf32>
    %c0_17 = arith.constant 0 : index
    %c0_18 = arith.constant 0 : index
    %41 = vector.load %arg5[%c0_17, %c0_18] : memref<8x128xf32, #tpu.memory_space<vmem>>, vector<8x128xf32>
    %c0_19 = arith.constant 0 : index
    %c0_20 = arith.constant 0 : index
    %42 = vector.load %arg5[%c0_19, %c0_20] : memref<8x128xf32, #tpu.memory_space<vmem>>, vector<8x128xf32>
    %43 = arith.mulf %41, %42 : vector<8x128xf32>
    %44 = vector.shape_cast %43 : vector<8x128xf32> to vector<1x8x128xf32>
    %cst_21 = arith.constant dense<0.000000e+00> : vector<1xf32>
    %45 = vector.multi_reduction <add>, %44, %cst_21 [1, 2] : vector<1x8x128xf32> to vector<1xf32>
    %46 = vector.shape_cast %45 : vector<1xf32> to vector<1x1x1xf32>
    %47 = vector.extract %46[0, 0, 0] : f32 from vector<1x1x1xf32>
    %48 = vector.broadcast %47 : f32 to vector<1x1xf32>
    %49 = arith.addf %40, %48 : vector<1x1xf32>
    %c0_22 = arith.constant 0 : index
    %c0_23 = arith.constant 0 : index
    %50 = vector.load %arg6[%c0_22, %c0_23] : memref<8x128xf32, #tpu.memory_space<vmem>>, vector<8x128xf32>
    %c0_24 = arith.constant 0 : index
    %c0_25 = arith.constant 0 : index
    %51 = vector.load %arg6[%c0_24, %c0_25] : memref<8x128xf32, #tpu.memory_space<vmem>>, vector<8x128xf32>
    %52 = arith.mulf %50, %51 : vector<8x128xf32>
    %53 = vector.shape_cast %52 : vector<8x128xf32> to vector<1x8x128xf32>
    %cst_26 = arith.constant dense<0.000000e+00> : vector<1xf32>
    %54 = vector.multi_reduction <add>, %53, %cst_26 [1, 2] : vector<1x8x128xf32> to vector<1xf32>
    %55 = vector.shape_cast %54 : vector<1xf32> to vector<1x1x1xf32>
    %56 = vector.extract %55[0, 0, 0] : f32 from vector<1x1x1xf32>
    %57 = vector.broadcast %56 : f32 to vector<1x1xf32>
    %58 = arith.addf %49, %57 : vector<1x1xf32>
    %cst_27 = arith.constant 5.000000e-05 : f32
    %59 = vector.broadcast %cst_27 : f32 to vector<1x1xf32>
    %60 = arith.mulf %59, %58 : vector<1x1xf32>
    %cst_28 = arith.constant 6.400000e+01 : f32
    %61 = vector.broadcast %cst_28 : f32 to vector<1x1xf32>
    %62 = arith.divf %60, %61 : vector<1x1xf32>
    %c0_29 = arith.constant 0 : index
    %c0_30 = arith.constant 0 : index
    %63 = vector.load %arg8[%c0_29, %c0_30] : memref<1x1xf32, #tpu.memory_space<vmem>>, vector<1x1xf32>
    %cst_31 = arith.constant 0.000000e+00 : f32
    %64 = vector.broadcast %cst_31 : f32 to vector<1x1xf32>
    %65 = arith.subf %64, %32 : vector<1x1xf32>
    %66 = arith.addf %65, %62 : vector<1x1xf32>
    %67 = arith.addf %63, %66 : vector<1x1xf32>
    %c0_32 = arith.constant 0 : index
    %c0_33 = arith.constant 0 : index
    %68 = vector.load %arg8[%c0_32, %c0_33] : memref<1x1xf32, #tpu.memory_space<vmem>>, vector<1x1xf32>
    tpu.vector_store %arg8[%c0_32, %c0_33], %67 {strides = array<i32>} : memref<1x1xf32, #tpu.memory_space<vmem>>, vector<1x1xf32>,
    %c0_i32_34 = arith.constant 0 : i32
    %69 = arith.cmpi eq, %arg0, %c0_i32_34 : i32
    %70 = arith.extui %69 : i1 to i32
    %c0_i32_35 = arith.constant 0 : i32
    %71 = arith.cmpi ne, %70, %c0_i32_35 : i32
    scf.if %71 {
      %c0_36 = arith.constant 0 : index
      %c0_37 = arith.constant 0 : index
      %72 = vector.load %arg8[%c0_36, %c0_37] : memref<1x1xf32, #tpu.memory_space<vmem>>, vector<1x1xf32>
      %c0_38 = arith.constant 0 : index
      %c0_39 = arith.constant 0 : index
      %73 = vector.load %arg7[%c0_38, %c0_39] : memref<1x1xf32, #tpu.memory_space<vmem>>, vector<1x1xf32>
      tpu.vector_store %arg7[%c0_38, %c0_39], %72 {strides = array<i32>} : memref<1x1xf32, #tpu.memory_space<vmem>>, vector<1x1xf32>,
    } else {
    }
    return
  }
  func.func @transform_0(%arg0: i32) -> (i32, i32) {
    %c0_i32 = arith.constant 0 : i32
    %c0_i32_0 = arith.constant 0 : i32
    return %arg0, %c0_i32 : i32, i32
  }
  func.func @transform_1(%arg0: i32) -> (i32, i32) {
    %c0_i32 = arith.constant 0 : i32
    %c0_i32_0 = arith.constant 0 : i32
    return %arg0, %c0_i32 : i32, i32
  }
  func.func @transform_2(%arg0: i32) -> (i32, i32) {
    %c0_i32 = arith.constant 0 : i32
    %c0_i32_0 = arith.constant 0 : i32
    return %arg0, %c0_i32 : i32, i32
  }
  func.func @transform_3(%arg0: i32) -> (i32, i32) {
    %c0_i32 = arith.constant 0 : i32
    %c0_i32_0 = arith.constant 0 : i32
    return %arg0, %c0_i32 : i32, i32
  }
  func.func @transform_4(%arg0: i32) -> (i32, i32) {
    %c0_i32 = arith.constant 0 : i32
    %c0_i32_0 = arith.constant 0 : i32
    return %arg0, %c0_i32 : i32, i32
  }
  func.func @transform_5(%arg0: i32) -> (i32, i32) {
    %c0_i32 = arith.constant 0 : i32
    %c0_i32_0 = arith.constant 0 : i32
    return %arg0, %c0_i32 : i32, i32
  }
  func.func @transform_6(%arg0: i32) -> (i32, i32) {
    %c0_i32 = arith.constant 0 : i32
    %c0_i32_0 = arith.constant 0 : i32
    %c0_i32_1 = arith.constant 0 : i32
    return %c0_i32, %c0_i32_0 : i32, i32
  }
}

</mosaic_0001>

<bundles_post_ra>
// kernel: lightgcn_forward.5
= control target key start
LH: loop header
LB: loop body
LE: loop exit
PB: predicated region body
PF: predicated region fallthrough
CT: control target
= control target key end

     0   :  { %s239_s0 = inlined_call_operand.vmem [shape: f32[8,128], index: 0, kind: input, shape index: {}]   ;;  %s240_s1 = inlined_call_operand.vmem [shape: f32[8,128], index: 1, kind: input, shape index: {}]   ;;  %s241_s2 = inlined_call_operand.vmem [shape: f32[8,128], index: 2, kind: input, shape index: {}]   ;;  %s242_s3 = inlined_call_operand.vmem [shape: f32[8,128], index: 3, kind: input, shape index: {}]   ;;  %s243_s4 = inlined_call_operand.vmem [shape: f32[8,128], index: 4, kind: input, shape index: {}]   ;;  %s244_s5 = inlined_call_operand.vmem [shape: f32[8,128], index: 5, kind: input, shape index: {}]   ;;  %s245_s6 = inlined_call_operand.hbm [shape: f32[1,1], index: 6, kind: output, shape index: {}]  }
   0x1   :  { %v30_v0 = vld [vmem:[%s239_s0] sm:$0xff] }
   0x2   :  { %v31_v1 = vld [vmem:[%s240_s1] sm:$0xff] }
   0x3   :  { %v32_v2 = vld [vmem:[%s241_s2] sm:$0xff] }
   0x4   :  { %v33_v3 = vsub.f32 %v31_v1, %v32_v2 }
   0x5   :  { %11 = vsyncpa [#allocation4], 0  ;;  %v65_v5 = vld [vmem:[%s242_s3] sm:$0xff]  ;;  %vm53_vm0 = vcmask 7168   ;;  %vm28_vm1 = vcmask 0   ;;  %v169_v22 = vmov 0.0  }
   0x6   :  { %v34_v4 = vmul.f32 %v33_v3, %v30_v0  ;;  %v77_v6 = vld [vmem:[%s243_s4] sm:$0xff]  ;;  %v66_v7 = vmul.f32 %v65_v5, %v65_v5  ;;  %29 = vst.msk [vmem:[#allocation2] sm:$0x1] %vm28_vm1, %v169_v22  ;;  %s170_s7 = smov [#allocation3]  }
   0x7   :  { %v78_v8 = vmul.f32 %v77_v6, %v77_v6  ;;  %v90_v19 = vld [vmem:[%s244_s5] sm:$0xff]  ;;  %s123_s8 = sshll.u32 %s170_s7, 4  ;;  %s124_s8 = int_to_ptr.vmem [resolvable:$true] %s123_s8 }
   0x8   :  { %35 = vadd.xlane.f32.xlu0 %v34_v4  ;;  %67 = vadd.xlane.f32.xlu1 %v66_v7  ;;  %v91_v21 = vmul.f32 %v90_v19, %v90_v19  ;;  %s145_s9 = scalar_lea.vmem %s124_s8, 16  ;;  %s149_s10 = scalar_lea.vmem %s124_s8, 32 }
   0x9   :  { %p146_p0 = scmp.ne.s32.totalorder %s124_s8, %s145_s9  ;;  %p150_p1 = scmp.lt.s32.totalorder %s124_s8, %s124_s8 }
   0xa   :  { %p151_p2 = scmp.lt.s32.totalorder %s149_s10, %s145_s9 }
   0xc   :  { %79 = vadd.xlane.f32.xlu1 %v78_v8  ;;  %p152_p3 = por %p151_p2, %p150_p1 }
   0xd   :  { %v106_v60 = vld [vmem:[#allocation2] sm:$0x1] }
   0xe   :  { %p153_p4 = pnand %p152_p3, %p146_p0 }
  0x95   :  { %v36_v9 = vpop.xlane.xlu0 %35  ;;  %v68_v23 = vpop.xlane.xlu1 %67 }
  0x96   :  { %v38_v10 = vand.u32 2147483647, %v36_v9  ;;  %v37_v16 = vmin.f32 %v36_v9, 0.0  ;;  %v69_v25 = vrot.slane %v68_v23, 4 }
  0x98   :  { %v39_v11 = vsub.f32 0.0, %v38_v10  ;;  %v70_v27 = vadd.f32 %v69_v25, %v68_v23 }
  0x99   :  { %v80_v24 = vpop.xlane.xlu1 %79 }
  0x9a   :  { %v40_v12 = vmul.f32 1.442695, %v39_v11  ;;  %v81_v26 = vrot.slane %v80_v24, 4  ;;  %v71_v29 = vrot.slane %v70_v27, 2 }
  0x9c   :  { %141 = vpow2.f32 %v40_v12  ;;  %v82_v28 = vadd.f32 %v81_v26, %v80_v24  ;;  %v72_v35 = vadd.f32 %v71_v29, %v70_v27 }
  0x9e   :  { %v83_v31 = vrot.slane %v82_v28, 2  ;;  %v73_v41 = vrot.slane %v72_v35, 1 }
  0xa0   :  { %v84_v36 = vadd.f32 %v83_v31, %v82_v28  ;;  %v74_v47 = vadd.f32 %v73_v41, %v72_v35 }
  0xa2   :  { %v85_v44 = vrot.slane %v84_v36, 1 }
  0xa4   :  { %v86_v48 = vadd.f32 %v85_v44, %v84_v36 }
  0xa6   :  { %v142_v13 = vpop.eup %141 }
  0xa7   :  { %v42_v14 = vadd.f32 1.0, %v142_v13 }
  0xa9   :  { %143 = vlog2.f32 %v42_v14 }
  0xb3   :  { %v144_v15 = vpop.eup %143 }
  0xb4   :  { %v44_v17 = vmul.f32 0.6931472, %v144_v15 }
  0xb6   :  { %v45_v18 = vsub.f32 %v37_v16, %v44_v17 }
  0xb8   :  { %v54_v20 = vsel %vm53_vm0, %v45_v18, 0.0 }
  0xb9   :  { %55 = vadd.xlane.f32.xlu0 %v54_v20 }
  0xbd   :  { %92 = vadd.xlane.f32.xlu0 %v91_v21 }
 0x146   :  { %v56_v30 = vpop.xlane.xlu0 %55 }
 0x147   :  { %v57_v32 = vrot.slane %v56_v30, 4 }
 0x149   :  { %v58_v33 = vadd.f32 %v57_v32, %v56_v30 }
 0x14a   :  { %v93_v34 = vpop.xlane.xlu0 %92 }
 0x14b   :  { %v59_v37 = vrot.slane %v58_v33, 2  ;;  %v94_v38 = vrot.slane %v93_v34, 4 }
 0x14d   :  { %v95_v39 = vadd.f32 %v94_v38, %v93_v34  ;;  %v60_v40 = vadd.f32 %v59_v37, %v58_v33 }
 0x14f   :  { %v96_v42 = vrot.slane %v95_v39, 2  ;;  %v61_v43 = vrot.slane %v60_v40, 1 }
 0x151   :  { %v97_v45 = vadd.f32 %v96_v42, %v95_v39  ;;  %v62_v46 = vadd.f32 %v61_v43, %v60_v40 }
 0x153   :  { %131 = vpush %v62_v46  ;;  %v98_v49 = vrot.slane %v97_v45, 1 }
 0x154   :  { %133 = vpush %v74_v47 }
 0x155   :  { %135 = vpush %v86_v48  ;;  %v99_v50 = vadd.f32 %v98_v49, %v97_v45 }
 0x157   :  { %137 = vpush %v99_v50 }
 0x184   :  { %s132_s2 = spop %131 }
 0x185   :  { %s134_s3 = spop %133  ;;  %v64_v56 = vstv %s132_s2 }
 0x186   :  { %v76_v51 = vstv %s134_s3  ;;  %s136_s4 = spop %135  ;;  %v107_v58 = vsub.f32 0.0, %v64_v56 }
 0x187   :  { %v88_v52 = vstv %s136_s4 }
 0x188   :  { %v89_v53 = vadd.f32 %v88_v52, %v76_v51  ;;  %s138_s5 = spop %137 }
 0x189   :  { %v101_v54 = vstv %s138_s5 }
 0x18a   :  { %v102_v55 = vadd.f32 %v101_v54, %v89_v53 }
 0x18c   :  { %v103_v57 = vmul.f32 5e-05, %v102_v55 }
 0x18e   :  { %v105_v59 = vmul.f32 0.015625, %v103_v57 }
 0x190   :  { %v108_v61 = vadd.f32 %v107_v58, %v105_v59 }
 0x192   :  { %v109_v62 = vadd.f32 %v108_v61, %v106_v60 }
 0x194   :  { %111 = vst.msk [vmem:[#allocation2] sm:$0x1] %vm28_vm1, %v109_v62 }
 0x19b   :  { %v115_v63 = vld [vmem:[#allocation2] sm:$0x1] }
 0x19c   :  { %116 = vst.msk [vmem:[#allocation3] sm:$0x1] %vm28_vm1, %v115_v63 }
 0x19d   :  { %156 = shalt.err (!%p153_p4)
}
 0x19e   :  { %s157_s13 = scalar_lea.hbm %s245_s6, 16 }
 0x19f   :  { %p158_p5 = scmp.ne.s32.totalorder %s245_s6, %s157_s13  ;;  %p161_p6 = scmp.lt.u32.totalorder %s157_s13, %s245_s6 }
 0x1a1   :  { %p163_p7 = pnand %p161_p6, %p158_p5 }
 0x1a3   :  { %166 = shalt.err (!%p163_p7)
}
 0x1a4   :  { %126 = dma.vmem_to_hbm [thread:$0]  %s124_s8, 16, %s245_s6, [#allocation4]  }
 0x1a5   :  { %167 = dma.done.wait [#allocation4], 16  }
 0x1a6   :  { %168 = vsyncadd [#allocation4], 4294967280 }
 0x1a7   :  { %130 = vsyncpa [#allocation4], 1 }

// kernel: lightgcn_forward.3
= control target key start
LH: loop header
LB: loop body
LE: loop exit
PB: predicated region body
PF: predicated region fallthrough
CT: control target
= control target key end

     0   :  { %vm267_vm0 = vcmask 523264   ;;  %s851_s1 = inlined_call_operand.vmem [shape: bf16[128,128], index: 1, kind: input, shape index: {}]   ;;  %s852_s0 = inlined_call_operand.vmem [shape: bf16[64,128], index: 0, kind: input, shape index: {}]   ;;  %s853_s2 = inlined_call_operand.vmem [shape: bf16[64,128], index: 2, kind: output, shape index: {0}]   ;;  %s854_s3 = inlined_call_operand.vmem [shape: bf16[128,128], index: 3, kind: output, shape index: {1}]  }
   0x1   :  { %v739_v0 = vld [vmem:[%s851_s1] sm:$0xff]   ;;  %v740_v1 = vld [vmem:[%s851_s1 + $0x8] sm:$0xff]   ;;  %v741_v2 = vld [vmem:[%s851_s1 + $0x10] sm:$0xff]  }
   0x2   :  { %690 = vmatprep.subr.bf16.mxu0 %v739_v0  ;;  %v742_v3 = vld [vmem:[%s851_s1 + $0x18] sm:$0xff]   ;;  %v747_v4 = vld [vmem:[%s852_s0] sm:$0xff]   ;;  %v748_v6 = vld [vmem:[%s852_s0 + $0x8] sm:$0xff]  }
   0x3   :  { %691 = vmatpush3.bf16.msra.mxu0 %v739_v0  ;;  %706 = vmatprep.mubr.bf16.mxu0 %v747_v4  ;;  %v743_v5 = vld [vmem:[%s851_s1 + $0x20] sm:$0xff]   ;;  %v744_v7 = vld [vmem:[%s851_s1 + $0x28] sm:$0xff]   ;;  %v749_v8 = vld [vmem:[%s852_s0 + $0x10] sm:$0xff]  }
   0x4   :  { %692 = vmatprep.subr.bf16.mxu0 %v740_v1  ;;  %251 = vxpose.xlu0.c.b16.start [1/4] (short) %v747_v4, 128  ;;  %v745_v9 = vld [vmem:[%s851_s1 + $0x30] sm:$0xff]   ;;  %v750_v10 = vld [vmem:[%s852_s0 + $0x18] sm:$0xff]  }
   0x5   :  { %v746_v11 = vld [vmem:[%s851_s1 + $0x38] sm:$0xff]  }
   0x7   :  { %693 = vmatpush3.bf16.msra.mxu0 %v740_v1 }
   0x8   :  { %694 = vmatprep.subr.bf16.mxu0 %v741_v2  ;;  %252 = vxpose.xlu0.c.b16.cont [2/4] (short) %v748_v6, 128 }
   0xb   :  { %695 = vmatpush3.bf16.msra.mxu0 %v741_v2 }
   0xc   :  { %696 = vmatprep.subr.bf16.mxu0 %v742_v3  ;;  %253 = vxpose.xlu0.c.b16.cont [3/4] (short) %v749_v8, 128 }
   0xf   :  { %697 = vmatpush3.bf16.msra.mxu0 %v742_v3 }
  0x10   :  { %698 = vmatprep.subr.bf16.mxu0 %v743_v5  ;;  %254 = vxpose.xlu0.c.b16.end [4/4] (short) %v750_v10, 128 }
  0x13   :  { %699 = vmatpush3.bf16.msra.mxu0 %v743_v5 }
  0x14   :  { %700 = vmatprep.subr.bf16.mxu0 %v744_v7 }
  0x17   :  { %701 = vmatpush3.bf16.msra.mxu0 %v744_v7 }
  0x18   :  { %702 = vmatprep.subr.bf16.mxu0 %v745_v9 }
  0x1b   :  { %703 = vmatpush3.bf16.msra.mxu0 %v745_v9 }
  0x1c   :  { %704 = vmatprep.subr.bf16.mxu0 %v746_v11 }
  0x1f   :  { %705 = vmatpush3.bf16.msra.mxu0 %v746_v11 }
  0x22   :  { %707 = vmatmul.mubr.bf16.vlgmr.msra.gmra.mrb[0].mxu0 %v748_v6 }
  0x23   :  { %710 = vmatprep.mubr.bf16.mxu0 %v749_v8 }
  0x2a   :  { %711 = vmatmul.mubr.bf16.gmra.mrb[4].mxu0 %v750_v10 }
  0x6a   :  { %v259_v12 = vpop.trf.xlu0 }
  0x6b   :  { %722 = vmatprep.mubr.msk.bf16.mxu1 %vm267_vm0, %v259_v12 }
  0x6e   :  { %v260_v19 = vpop.trf.xlu0 }
  0x72   :  { %v261_v26 = vpop.trf.xlu0 }
  0x76   :  { %v262_v27 = vpop.trf.xlu0 }
  0x7a   :  { %v263_v28 = vpop.trf.xlu0 }
  0x7e   :  { %v264_v29 = vpop.trf.xlu0 }
  0x82   :  { %v265_v30 = vpop.trf.xlu0 }
  0x86   :  { %v266_v31 = vpop.trf.xlu0 }
  0xf5   :  { %v708_v13 = vpop.f32.mrb[0].mxu0 }
  0xf6   :  { %v164_v14 = vpop.f32.mrb[1].mxu0 }
  0xf7   :  { %v709_v15 = vpop.f32.mrb[2].mxu0 }
  0xf8   :  { %v196_v16 = vpack.c.bf16 %v709_v15, %v708_v13  ;;  %v167_v17 = vpop.f32.mrb[3].mxu0 }
  0xf9   :  { %v195_v18 = vpack.c.bf16 %v167_v17, %v164_v14 }
  0xfa   :  { %656 = vst [vmem:[%s853_s2 + $0x8] sm:$0xff] %v196_v16  }
  0xfb   :  { %600 = vst [vmem:[%s853_s2] sm:$0xff] %v195_v18   ;;  %714 = vmatprep.subr.bf16.mxu1 %v195_v18 }
  0xfc   :  { %715 = vmatpush3.bf16.msra.mxu1 %v195_v18 }
  0xfd   :  { %v712_v20 = vpop.f32.mrb[4].mxu0  ;;  %716 = vmatprep.subr.bf16.mxu1 %v196_v16 }
  0xfe   :  { %v180_v21 = vpop.f32.mrb[5].mxu0 }
  0xff   :  { %v713_v22 = vpop.f32.mrb[6].mxu0 }
 0x100   :  { %v198_v23 = vpack.c.bf16 %v713_v22, %v712_v20  ;;  %v183_v24 = vpop.f32.mrb[7].mxu0  ;;  %717 = vmatpush3.bf16.msra.mxu1 %v196_v16 }
 0x101   :  { %v197_v25 = vpack.c.bf16 %v183_v24, %v180_v21 }
 0x102   :  { %658 = vst [vmem:[%s853_s2 + $0x18] sm:$0xff] %v198_v23  }
 0x103   :  { %657 = vst [vmem:[%s853_s2 + $0x10] sm:$0xff] %v197_v25   ;;  %718 = vmatprep.subr.bf16.mxu1 %v197_v25 }
 0x104   :  { %719 = vmatpush3.bf16.msra.mxu1 %v197_v25 }
 0x105   :  { %720 = vmatprep.subr.bf16.mxu1 %v198_v23 }
 0x108   :  { %721 = vmatpush3.bf16.msra.mxu1 %v198_v23 }
 0x10b   :  { %723 = vmatmul.mubr.msk.bf16.vlgmr.msra.gmra.mrb[0].mxu1 %vm267_vm0, %v260_v19 }
 0x10c   :  { %726 = vmatprep.mubr.msk.bf16.mxu1 %vm267_vm0, %v261_v26 }
 0x113   :  { %727 = vmatmul.mubr.msk.bf16.gmra.mrb[4].mxu1 %vm267_vm0, %v262_v27 }
 0x114   :  { %730 = vmatprep.mubr.msk.bf16.mxu1 %vm267_vm0, %v263_v28 }
 0x11b   :  { %731 = vmatmul.mubr.msk.bf16.gmra.mrb[8].mxu1 %vm267_vm0, %v264_v29 }
 0x11c   :  { %734 = vmatprep.mubr.msk.bf16.mxu1 %vm267_vm0, %v265_v30 }
 0x123   :  { %735 = vmatmul.mubr.msk.bf16.gmra.mrb[12].mxu1 %vm267_vm0, %v266_v31 }
 0x1de   :  { %v724_v32 = vpop.f32.mrb[0].mxu1 }
 0x1df   :  { %v326_v33 = vpop.f32.mrb[1].mxu1 }
 0x1e0   :  { %v725_v34 = vpop.f32.mrb[2].mxu1 }
 0x1e1   :  { %v624_v35 = vpack.c.bf16 %v725_v34, %v724_v32  ;;  %v329_v36 = vpop.f32.mrb[3].mxu1 }
 0x1e2   :  { %v619_v37 = vpack.c.bf16 %v329_v36, %v326_v33 }
 0x1e3   :  { %659 = vst [vmem:[%s854_s3 + $0x8] sm:$0xff] %v624_v35  }
 0x1e4   :  { %620 = vst [vmem:[%s854_s3] sm:$0xff] %v619_v37  }
 0x1e6   :  { %v728_v38 = vpop.f32.mrb[4].mxu1 }
 0x1e7   :  { %v342_v39 = vpop.f32.mrb[5].mxu1 }
 0x1e8   :  { %v729_v40 = vpop.f32.mrb[6].mxu1 }
 0x1e9   :  { %v634_v41 = vpack.c.bf16 %v729_v40, %v728_v38  ;;  %v345_v42 = vpop.f32.mrb[7].mxu1 }
 0x1ea   :  { %v629_v43 = vpack.c.bf16 %v345_v42, %v342_v39 }
 0x1eb   :  { %661 = vst [vmem:[%s854_s3 + $0x18] sm:$0xff] %v634_v41  }
 0x1ec   :  { %660 = vst [vmem:[%s854_s3 + $0x10] sm:$0xff] %v629_v43  }
 0x1ee   :  { %v732_v44 = vpop.f32.mrb[8].mxu1 }
 0x1ef   :  { %v358_v45 = vpop.f32.mrb[9].mxu1 }
 0x1f0   :  { %v733_v46 = vpop.f32.mrb[10].mxu1 }
 0x1f1   :  { %v644_v47 = vpack.c.bf16 %v733_v46, %v732_v44  ;;  %v361_v48 = vpop.f32.mrb[11].mxu1 }
 0x1f2   :  { %v639_v49 = vpack.c.bf16 %v361_v48, %v358_v45 }
 0x1f3   :  { %663 = vst [vmem:[%s854_s3 + $0x28] sm:$0xff] %v644_v47  }
 0x1f4   :  { %662 = vst [vmem:[%s854_s3 + $0x20] sm:$0xff] %v639_v49  }
 0x1f6   :  { %v736_v50 = vpop.f32.mrb[12].mxu1 }
 0x1f7   :  { %v374_v51 = vpop.f32.mrb[13].mxu1 }
 0x1f8   :  { %v737_v52 = vpop.f32.mrb[14].mxu1 }
 0x1f9   :  { %v654_v53 = vpack.c.bf16 %v737_v52, %v736_v50  ;;  %v377_v54 = vpop.f32.mrb[15].mxu1 }
 0x1fa   :  { %v649_v55 = vpack.c.bf16 %v377_v54, %v374_v51 }
 0x1fb   :  { %665 = vst [vmem:[%s854_s3 + $0x38] sm:$0xff] %v654_v53  }
 0x1fc   :  { %664 = vst [vmem:[%s854_s3 + $0x30] sm:$0xff] %v649_v55  }

</bundles_post_ra>
